<compile_context>
chip_gen: v6e
topology: v6e:2x2x1
jax: 0.10.0
libtpu: 0.0.40
codegen_flags: <defaults>
</compile_context>

<pallas_src>
import jax
import jax.numpy as jnp
from jax.experimental import pallas as pl
from jax.experimental.pallas import tpu as pltpu


def _round_up(n, m):
    return ((n + m - 1) // m) * m


def _make_style_kernel(depth, lr_mul, compute_dtype, neg_slope=0.2, eps=1e-12):
    def kernel(x_ref, w_ref, b_ref, o_ref):
        # L2 normalize over the feature dim (torch F.normalize: clamp the norm at eps).
        x = x_ref[...].astype(jnp.float32)
        norm = jnp.sqrt(jnp.sum(x * x, axis=1, keepdims=True))
        h = x * pl.reciprocal(jnp.maximum(norm, eps), approx=False)

        # depth x (EqualLinear -> LeakyReLU), statically unrolled.
        for l in range(depth):
            # Weights are pre-transposed (D_in, D_out): no in-kernel transpose.
            acc = jnp.dot(h.astype(compute_dtype), w_ref[l],
                          preferred_element_type=jnp.float32)
            # lr_mul folded out of the weight scale; bias kept in f32.
            y = (acc + b_ref[l]) * lr_mul
            # LeakyReLU(0.2) as a single max (neg_slope > 0).
            h = jnp.maximum(y, neg_slope * y)

        o_ref[...] = h.astype(o_ref.dtype)

    return kernel


def style_network_forward(x, weights, biases, lr_mul=0.1,
                          weight_dtype=jnp.bfloat16):
    """x: (B, D) f32; weights: (depth, D, D) [torch F.linear layout, y = x@W.T + b];
    biases: (depth, D)."""
    B, D = x.shape
    depth = weights.shape[0]

    # Lane-dense padding: D -> multiple of 128, B -> multiple of the batch tile.
    D_pad = _round_up(D, 128)
    TB = min(_round_up(B, 8), 128)          # batch tile (sublane-aligned)
    B_pad = _round_up(B, TB)

    x_p = jnp.zeros((B_pad, D_pad), jnp.float32).at[:B, :D].set(
        x.astype(jnp.float32))
    # Pre-transpose to (depth, D_in, D_out) and cast to bf16 (halves weight DMA).
    w_t = jnp.transpose(weights, (0, 2, 1)).astype(weight_dtype)
    w_p = jnp.zeros((depth, D_pad, D_pad), weight_dtype).at[:, :D, :D].set(w_t)
    b_p = jnp.zeros((depth, D_pad), jnp.float32).at[:, :D].set(
        biases.astype(jnp.float32))

    kernel = _make_style_kernel(depth, lr_mul, weight_dtype)

    # Explicit VMEM budget: resident weight stack + bias + double-buffered x/out tiles.
    vmem_needed = (w_p.size * w_p.dtype.itemsize
                   + b_p.size * 4
                   + 2 * 2 * TB * D_pad * 4
                   + (1 << 20))
    vmem_limit = int(min(max(2 * vmem_needed, 32 * 2**20), 64 * 2**20))

    out_p = pl.pallas_call(
        kernel,
        out_shape=jax.ShapeDtypeStruct((B_pad, D_pad), jnp.float32),
        grid_spec=pltpu.PrefetchScalarGridSpec(
            num_scalar_prefetch=0,
            grid=(B_pad // TB,),                                   # batch tiles only
            in_specs=[
                pl.BlockSpec((TB, D_pad), lambda bt: (bt, 0)),     # x tile
                pl.BlockSpec((depth, D_pad, D_pad), lambda bt: (0, 0, 0)),  # all weights (resident)
                pl.BlockSpec((depth, D_pad), lambda bt: (0, 0)),   # all biases (resident)
            ],
            out_specs=pl.BlockSpec((TB, D_pad), lambda bt: (bt, 0)),
        ),
        compiler_params=pltpu.CompilerParams(
            dimension_semantics=("parallel",),   # batch tiles independent (v7x 2 TCs)
            vmem_limit_bytes=vmem_limit,
        ),
    )(x_p, w_p, b_p)

    return out_p[:B, :D]


def style_network_reference(x, weights, biases, lr_mul=0.1, neg_slope=0.2, eps=1e-12):
    """Pure-JAX f32 reference with torch semantics: y = x @ (W*lr).T + b*lr."""
    norm = jnp.sqrt(jnp.sum(x * x, axis=1, keepdims=True))
    h = x / jnp.maximum(norm, eps)
    for l in range(weights.shape[0]):
        y = h @ (weights[l] * lr_mul).T + biases[l] * lr_mul
        h = jnp.where(y >= 0, y, neg_slope * y)
    return h


if __name__ == "__main__":
    # Small shapes consistent with the module: batch=8, dim=32, depth=4.
    B, D, DEPTH = 8, 32, 4
    LR_MUL = 0.1

    key = jax.random.PRNGKey(0)
    kx, kw, kb = jax.random.split(key, 3)

    x = jax.random.normal(kx, (B, D), dtype=jnp.float32)
    # EqualLinear: weight ~ randn(dim_out, dim); bias exercised with small values.
    weights = jax.random.normal(kw, (DEPTH, D, D), dtype=jnp.float32)
    biases = 0.1 * jax.random.normal(kb, (DEPTH, D), dtype=jnp.float32)

    out = style_network_forward(x, weights, biases, lr_mul=LR_MUL)
    out = jax.block_until_ready(out)

    # Fair numeric check: reference uses the same bf16-rounded weights the kernel sees
    # (remaining deltas: lr_mul folding + bf16 activation cast at the dot input).
    w_check = weights.astype(jnp.bfloat16).astype(jnp.float32)
    ref = style_network_reference(x, w_check, biases, lr_mul=LR_MUL)

    assert out.shape == (B, D)
    assert jnp.allclose(out, ref, atol=2e-3, rtol=2e-2), "mismatch vs reference"

    print("KERNEL_OK")
</pallas_src>

<mosaic_0001>
module attributes {stable_mosaic.version = 11 : i64} {
  func.func @kernel(%arg0: i32, %arg1: memref<8x128xf32, #tpu.memory_space<vmem>>, %arg2: memref<4x128x128xbf16, #tpu.memory_space<vmem>>, %arg3: memref<4x128xf32, #tpu.memory_space<vmem>>, %arg4: memref<8x128xf32, #tpu.memory_space<vmem>>) attributes {dimension_semantics = [#tpu.dimension_semantics<parallel>], iteration_bounds = array<i64: 1>, scalar_prefetch = 0 : i64, scratch_operands = 0 : i64, tpu.core_type = #tpu.core_type<tc>, window_params = [{transform_indices = @transform_0, window_bounds = array<i64: 8, 128>}, {pipeline_mode = #tpu.pipeline_mode<synchronous>, transform_indices = @transform_1, window_bounds = array<i64: 4, 128, 128>}, {pipeline_mode = #tpu.pipeline_mode<synchronous>, transform_indices = @transform_2, window_bounds = array<i64: 4, 128>}, {transform_indices = @transform_3, window_bounds = array<i64: 8, 128>}]} {
    %c0 = arith.constant 0 : index
    %c0_0 = arith.constant 0 : index
    %0 = vector.load %arg1[%c0, %c0_0] : memref<8x128xf32, #tpu.memory_space<vmem>>, vector<8x128xf32>
    %1 = arith.mulf %0, %0 : vector<8x128xf32>
    %cst = arith.constant dense<0.000000e+00> : vector<8xf32>
    %2 = vector.multi_reduction <add>, %1, %cst [1] : vector<8x128xf32> to vector<8xf32>
    %3 = vector.shape_cast %2 : vector<8xf32> to vector<8x1xf32>
    %4 = math.sqrt %3 : vector<8x1xf32>
    %cst_1 = arith.constant 9.99999996E-13 : f32
    %5 = vector.broadcast %cst_1 : f32 to vector<8x1xf32>
    %6 = arith.maximumf %4, %5 : vector<8x1xf32>
    %7 = tpu.reciprocal %6 : vector<8x1xf32> -> vector<8x1xf32>
    %8 = vector.broadcast %7 : vector<8x1xf32> to vector<8x128xf32>
    %9 = arith.mulf %0, %8 : vector<8x128xf32>
    %10 = arith.truncf %9 : vector<8x128xf32> to vector<8x128xbf16>
    %c0_2 = arith.constant 0 : index
    %c0_3 = arith.constant 0 : index
    %c0_4 = arith.constant 0 : index
    %11 = vector.load %arg2[%c0_2, %c0_3, %c0_4] : memref<4x128x128xbf16, #tpu.memory_space<vmem>>, vector<1x128x128xbf16>
    %12 = vector.shape_cast %11 : vector<1x128x128xbf16> to vector<128x128xbf16>
    %cst_5 = arith.constant dense<0.000000e+00> : vector<8x128xf32>
    %13 = tpu.matmul %10, %12, %cst_5 {dimension_numbers = #tpu.dot_dimension_numbers<[1], [0], [0], [1], [0, 0, 1, 1], [], []>} : vector<8x128xbf16>, vector<128x128xbf16>, vector<8x128xf32> -> vector<8x128xf32>
    %c0_6 = arith.constant 0 : index
    %c0_7 = arith.constant 0 : index
    %14 = vector.load %arg3[%c0_6, %c0_7] : memref<4x128xf32, #tpu.memory_space<vmem>>, vector<1x128xf32>
    %15 = vector.shape_cast %14 : vector<1x128xf32> to vector<128xf32>
    %16 = vector.shape_cast %15 : vector<128xf32> to vector<1x128xf32>
    %17 = vector.broadcast %16 : vector<1x128xf32> to vector<8x128xf32>
    %18 = arith.addf %13, %17 : vector<8x128xf32>
    %cst_8 = arith.constant 1.000000e-01 : f32
    %19 = vector.broadcast %cst_8 : f32 to vector<8x128xf32>
    %20 = arith.mulf %18, %19 : vector<8x128xf32>
    %cst_9 = arith.constant 2.000000e-01 : f32
    %21 = vector.broadcast %cst_9 : f32 to vector<8x128xf32>
    %22 = arith.mulf %21, %20 : vector<8x128xf32>
    %23 = arith.maximumf %20, %22 : vector<8x128xf32>
    %24 = arith.truncf %23 : vector<8x128xf32> to vector<8x128xbf16>
    %c1 = arith.constant 1 : index
    %c0_10 = arith.constant 0 : index
    %c0_11 = arith.constant 0 : index
    %25 = vector.load %arg2[%c1, %c0_10, %c0_11] : memref<4x128x128xbf16, #tpu.memory_space<vmem>>, vector<1x128x128xbf16>
    %26 = vector.shape_cast %25 : vector<1x128x128xbf16> to vector<128x128xbf16>
    %cst_12 = arith.constant dense<0.000000e+00> : vector<8x128xf32>
    %27 = tpu.matmul %24, %26, %cst_12 {dimension_numbers = #tpu.dot_dimension_numbers<[1], [0], [0], [1], [0, 0, 1, 1], [], []>} : vector<8x128xbf16>, vector<128x128xbf16>, vector<8x128xf32> -> vector<8x128xf32>
    %c1_13 = arith.constant 1 : index
    %c0_14 = arith.constant 0 : index
    %28 = vector.load %arg3[%c1_13, %c0_14] : memref<4x128xf32, #tpu.memory_space<vmem>>, vector<1x128xf32>
    %29 = vector.shape_cast %28 : vector<1x128xf32> to vector<128xf32>
    %30 = vector.shape_cast %29 : vector<128xf32> to vector<1x128xf32>
    %31 = vector.broadcast %30 : vector<1x128xf32> to vector<8x128xf32>
    %32 = arith.addf %27, %31 : vector<8x128xf32>
    %cst_15 = arith.constant 1.000000e-01 : f32
    %33 = vector.broadcast %cst_15 : f32 to vector<8x128xf32>
    %34 = arith.mulf %32, %33 : vector<8x128xf32>
    %cst_16 = arith.constant 2.000000e-01 : f32
    %35 = vector.broadcast %cst_16 : f32 to vector<8x128xf32>
    %36 = arith.mulf %35, %34 : vector<8x128xf32>
    %37 = arith.maximumf %34, %36 : vector<8x128xf32>
    %38 = arith.truncf %37 : vector<8x128xf32> to vector<8x128xbf16>
    %c2 = arith.constant 2 : index
    %c0_17 = arith.constant 0 : index
    %c0_18 = arith.constant 0 : index
    %39 = vector.load %arg2[%c2, %c0_17, %c0_18] : memref<4x128x128xbf16, #tpu.memory_space<vmem>>, vector<1x128x128xbf16>
    %40 = vector.shape_cast %39 : vector<1x128x128xbf16> to vector<128x128xbf16>
    %cst_19 = arith.constant dense<0.000000e+00> : vector<8x128xf32>
    %41 = tpu.matmul %38, %40, %cst_19 {dimension_numbers = #tpu.dot_dimension_numbers<[1], [0], [0], [1], [0, 0, 1, 1], [], []>} : vector<8x128xbf16>, vector<128x128xbf16>, vector<8x128xf32> -> vector<8x128xf32>
    %c2_20 = arith.constant 2 : index
    %c0_21 = arith.constant 0 : index
    %42 = vector.load %arg3[%c2_20, %c0_21] : memref<4x128xf32, #tpu.memory_space<vmem>>, vector<1x128xf32>
    %43 = vector.shape_cast %42 : vector<1x128xf32> to vector<128xf32>
    %44 = vector.shape_cast %43 : vector<128xf32> to vector<1x128xf32>
    %45 = vector.broadcast %44 : vector<1x128xf32> to vector<8x128xf32>
    %46 = arith.addf %41, %45 : vector<8x128xf32>
    %cst_22 = arith.constant 1.000000e-01 : f32
    %47 = vector.broadcast %cst_22 : f32 to vector<8x128xf32>
    %48 = arith.mulf %46, %47 : vector<8x128xf32>
    %cst_23 = arith.constant 2.000000e-01 : f32
    %49 = vector.broadcast %cst_23 : f32 to vector<8x128xf32>
    %50 = arith.mulf %49, %48 : vector<8x128xf32>
    %51 = arith.maximumf %48, %50 : vector<8x128xf32>
    %52 = arith.truncf %51 : vector<8x128xf32> to vector<8x128xbf16>
    %c3 = arith.constant 3 : index
    %c0_24 = arith.constant 0 : index
    %c0_25 = arith.constant 0 : index
    %53 = vector.load %arg2[%c3, %c0_24, %c0_25] : memref<4x128x128xbf16, #tpu.memory_space<vmem>>, vector<1x128x128xbf16>
    %54 = vector.shape_cast %53 : vector<1x128x128xbf16> to vector<128x128xbf16>
    %cst_26 = arith.constant dense<0.000000e+00> : vector<8x128xf32>
    %55 = tpu.matmul %52, %54, %cst_26 {dimension_numbers = #tpu.dot_dimension_numbers<[1], [0], [0], [1], [0, 0, 1, 1], [], []>} : vector<8x128xbf16>, vector<128x128xbf16>, vector<8x128xf32> -> vector<8x128xf32>
    %c3_27 = arith.constant 3 : index
    %c0_28 = arith.constant 0 : index
    %56 = vector.load %arg3[%c3_27, %c0_28] : memref<4x128xf32, #tpu.memory_space<vmem>>, vector<1x128xf32>
    %57 = vector.shape_cast %56 : vector<1x128xf32> to vector<128xf32>
    %58 = vector.shape_cast %57 : vector<128xf32> to vector<1x128xf32>
    %59 = vector.broadcast %58 : vector<1x128xf32> to vector<8x128xf32>
    %60 = arith.addf %55, %59 : vector<8x128xf32>
    %cst_29 = arith.constant 1.000000e-01 : f32
    %61 = vector.broadcast %cst_29 : f32 to vector<8x128xf32>
    %62 = arith.mulf %60, %61 : vector<8x128xf32>
    %cst_30 = arith.constant 2.000000e-01 : f32
    %63 = vector.broadcast %cst_30 : f32 to vector<8x128xf32>
    %64 = arith.mulf %63, %62 : vector<8x128xf32>
    %65 = arith.maximumf %62, %64 : vector<8x128xf32>
    %c0_31 = arith.constant 0 : index
    %c0_32 = arith.constant 0 : index
    %66 = vector.load %arg4[%c0_31, %c0_32] : memref<8x128xf32, #tpu.memory_space<vmem>>, vector<8x128xf32>
    tpu.vector_store %arg4[%c0_31, %c0_32], %65 {strides = array<i32>} : memref<8x128xf32, #tpu.memory_space<vmem>>, vector<8x128xf32>,
    return
  }
  func.func @transform_0(%arg0: i32) -> (i32, i32) {
    %c0_i32 = arith.constant 0 : i32
    %c0_i32_0 = arith.constant 0 : i32
    return %arg0, %c0_i32 : i32, i32
  }
  func.func @transform_1(%arg0: i32) -> (i32, i32, i32) {
    %c0_i32 = arith.constant 0 : i32
    %c0_i32_0 = arith.constant 0 : i32
    %c0_i32_1 = arith.constant 0 : i32
    %c0_i32_2 = arith.constant 0 : i32
    return %c0_i32, %c0_i32_0, %c0_i32_1 : i32, i32, i32
  }
  func.func @transform_2(%arg0: i32) -> (i32, i32) {
    %c0_i32 = arith.constant 0 : i32
    %c0_i32_0 = arith.constant 0 : i32
    %c0_i32_1 = arith.constant 0 : i32
    return %c0_i32, %c0_i32_0 : i32, i32
  }
  func.func @transform_3(%arg0: i32) -> (i32, i32) {
    %c0_i32 = arith.constant 0 : i32
    %c0_i32_0 = arith.constant 0 : i32
    return %arg0, %c0_i32 : i32, i32
  }
}

</mosaic_0001>

<bundles_post_ra>
// kernel: tpu_custom_call.1
= control target key start
LH: loop header
LB: loop body
LE: loop exit
PB: predicated region body
PF: predicated region fallthrough
CT: control target
= control target key end

     0   :  { %8 = vsyncpa [#allocation3], 0  ;;  %s901_s0 = inlined_call_operand.hbm [shape: f32[8,128], index: 0, kind: input, shape index: {}]   ;;  %s902_s1 = inlined_call_operand.hbm [shape: bf16[4,128,128], index: 1, kind: input, shape index: {}]   ;;  %s903_s2 = inlined_call_operand.hbm [shape: f32[4,128], index: 2, kind: input, shape index: {}]   ;;  %s904_s3 = inlined_call_operand.hbm [shape: f32[8,128], index: 3, kind: output, shape index: {}]  }
   0x1   :  { %9 = vsyncpa [#allocation6], 0 }
   0x2   :  { %10 = vsyncpa [#allocation4], 0  ;;  %s821_s12 = smov [#allocation5]  }
   0x3   :  { %s26_s13 = sshll.u32 %s821_s12, 4  ;;  %s27_s13 = int_to_ptr.vmem [resolvable:$true] %s26_s13 }
   0x4   :  { %s743_s14 = scalar_lea.vmem %s27_s13, 4096  ;;  %p748_p1 = scmp.lt.s32.totalorder %s27_s13, %s27_s13 }
   0x5   :  { %p744_p0 = scmp.ne.s32.totalorder %s27_s13, %s743_s14  ;;  %p749_p2 = scmp.lt.s32.totalorder %s743_s14, %s743_s14 }
   0x7   :  { %p750_p3 = por %p749_p2, %p748_p1 }
   0x9   :  { %p751_p4 = pnand %p750_p3, %p744_p0 }
   0xb   :  { %754 = shalt.err (!%p751_p4)
}
   0xc   :  { %s822_s15 = smov 64   ;;  %s823_s16 = smov 4  }
   0xd   :  { %32 = dma.hbm_to_vmem [thread:$0]  %s902_s1, 4096, %s27_s13, [#allocation6], %s822_s15, %s822_s15, %s823_s16  }
   0xe   :  { %s824_s19 = smov [#allocation2]   ;;  %s825_s21 = smov [#allocation7]  }
   0xf   :  { %s17_s20 = sshll.u32 %s824_s19, 4  ;;  %s39_s22 = sshll.u32 %s825_s21, 4  ;;  %s18_s20 = int_to_ptr.vmem [resolvable:$true] %s17_s20  ;;  %s40_s22 = int_to_ptr.vmem [resolvable:$true] %s39_s22 }
  0x10   :  { %s763_s23 = scalar_lea.vmem %s18_s20, 128  ;;  %p768_p6 = scmp.lt.s32.totalorder %s18_s20, %s18_s20 }
  0x11   :  { %p764_p5 = scmp.ne.s32.totalorder %s18_s20, %s763_s23  ;;  %p769_p7 = scmp.lt.s32.totalorder %s763_s23, %s763_s23 }
  0x13   :  { %p770_p8 = por %p769_p7, %p768_p6 }
  0x15   :  { %p771_p9 = pnand %p770_p8, %p764_p5 }
  0x17   :  { %774 = shalt.err (!%p771_p9)
}
  0x18   :  { %20 = dma.hbm_to_vmem [thread:$0]  %s901_s0, 128, %s18_s20, [#allocation3]  }
  0x19   :  { %s783_s26 = scalar_lea.vmem %s40_s22, 64  ;;  %p788_p11 = scmp.lt.s32.totalorder %s40_s22, %s40_s22 }
  0x1a   :  { %p784_p10 = scmp.ne.s32.totalorder %s40_s22, %s783_s26  ;;  %p789_p12 = scmp.lt.s32.totalorder %s783_s26, %s783_s26 }
  0x1c   :  { %p790_p13 = por %p789_p12, %p788_p11 }
  0x1e   :  { %p791_p0 = pnand %p790_p13, %p784_p10 }
  0x20   :  { %794 = shalt.err (!%p791_p0)
}
  0x21   :  { %42 = dma.hbm_to_vmem [thread:$0]  %s903_s2, 64, %s40_s22, [#allocation6]  }
  0x22   :  { %815 = dma.done.wait [#allocation3], 128  }
  0x23   :  { %816 = vsyncadd [#allocation3], 4294967168 }
  0x24   :  { %817 = dma.done.wait [#allocation6], 4160  }
  0x25   :  { %818 = vsyncadd [#allocation6], 4294963136  ;;  %v53_v0 = vld [vmem:[#allocation2] sm:$0xff]  ;;  %v826_v3 = vmov 0.0   ;;  %v700_v4 = vld [vmem:[#allocation5 + $0x30] sm:$0xff]   ;;  %vm827_vm0 = vmmov 0  }
  0x26   :  { %v54_v1 = vmul.f32 %v53_v0, %v53_v0  ;;  %v699_v2 = vld [vmem:[#allocation5 + $0x38] sm:$0xff]   ;;  %611 = vmatprep.subr.bf16.mxu0 %v826_v3  ;;  %631 = vmatprep.subr.bf16.mxu1 %v826_v3  ;;  %v701_v5 = vld [vmem:[#allocation5 + $0x28] sm:$0xff]   ;;  %v702_v6 = vld [vmem:[#allocation5 + $0x20] sm:$0xff]   ;;  %s828_s0 = smov [#allocation8]  }
  0x27   :  { %612 = vmatpush3.bf16.msra.mxu0 %v699_v2  ;;  %v703_v7 = vld [vmem:[#allocation5 + $0x18] sm:$0xff]   ;;  %627 = vmatprep.mubr.msk.bf16.mxu0 %vm827_vm0, %v826_v3  ;;  %v704_v8 = vld [vmem:[#allocation5 + $0x10] sm:$0xff]   ;;  %v705_v9 = vld [vmem:[#allocation5 + $0x8] sm:$0xff]   ;;  %s529_s2 = sshll.u32 %s828_s0, 4  ;;  %s530_s2 = int_to_ptr.vmem [resolvable:$true] %s529_s2 }
  0x28   :  { %55 = vadd.xlane.f32.xlu0 %v54_v1  ;;  %613 = vmatprep.subr.bf16.mxu0 %v826_v3  ;;  %v706_v10 = vld [vmem:[#allocation5] sm:$0xff]   ;;  %v707_v11 = vld [vmem:[#allocation5 + $0x78] sm:$0xff]   ;;  %v708_v12 = vld [vmem:[#allocation5 + $0x70] sm:$0xff]   ;;  %s795_s28 = scalar_lea.vmem %s530_s2, 128  ;;  %p800_p2 = scmp.lt.s32.totalorder %s530_s2, %s530_s2 }
  0x29   :  { %647 = vmatprep.mubr.msk.bf16.mxu1 %vm827_vm0, %v826_v3  ;;  %632 = vmatpush3.bf16.msra.mxu1 %v707_v11  ;;  %v709_v13 = vld [vmem:[#allocation5 + $0x68] sm:$0xff]   ;;  %v710_v14 = vld [vmem:[#allocation5 + $0x60] sm:$0xff]   ;;  %v711_v15 = vld [vmem:[#allocation5 + $0x58] sm:$0xff]   ;;  %p796_p1 = scmp.ne.s32.totalorder %s530_s2, %s795_s28  ;;  %p801_p3 = scmp.lt.s32.totalorder %s795_s28, %s795_s28 }
  0x2a   :  { %633 = vmatprep.subr.bf16.mxu1 %v826_v3  ;;  %v712_v26 = vld [vmem:[#allocation5 + $0x50] sm:$0xff]   ;;  %v713_v27 = vld [vmem:[#allocation5 + $0x48] sm:$0xff]   ;;  %v714_v28 = vld [vmem:[#allocation5 + $0x40] sm:$0xff]  }
  0x2b   :  { %614 = vmatpush3.bf16.msra.mxu0 %v700_v4  ;;  %v715_v29 = vld [vmem:[#allocation5 + $0xb8] sm:$0xff]   ;;  %v716_v30 = vld [vmem:[#allocation5 + $0xb0] sm:$0xff]   ;;  %v717_v31 = vld [vmem:[#allocation5 + $0xa8] sm:$0xff]   ;;  %p802_p4 = por %p801_p3, %p800_p2 }
  0x2c   :  { %615 = vmatprep.subr.bf16.mxu0 %v826_v3  ;;  %v718_v32 = vld [vmem:[#allocation5 + $0xa0] sm:$0xff]   ;;  %v719_v33 = vld [vmem:[#allocation5 + $0x98] sm:$0xff]   ;;  %v720_v44 = vld [vmem:[#allocation5 + $0x90] sm:$0xff]  }
  0x2d   :  { %634 = vmatpush3.bf16.msra.mxu1 %v708_v12  ;;  %v539_v34 = vld [vmem:[#allocation7] ss:$0 sm:$0xff]  ;;  %v721_v45 = vld [vmem:[#allocation5 + $0x88] sm:$0xff]   ;;  %v723_v47 = vld [vmem:[#allocation5 + $0xf8] sm:$0xff]   ;;  %p803_p5 = pnand %p802_p4, %p796_p1 }
  0x2e   :  { %635 = vmatprep.subr.bf16.mxu1 %v826_v3  ;;  %v722_v46 = vld [vmem:[#allocation5 + $0x80] sm:$0xff]   ;;  %v724_v48 = vld [vmem:[#allocation5 + $0xf0] sm:$0xff]   ;;  %v725_v49 = vld [vmem:[#allocation5 + $0xe8] sm:$0xff]  }
  0x2f   :  { %616 = vmatpush3.bf16.msra.mxu0 %v701_v5  ;;  %v726_v50 = vld [vmem:[#allocation5 + $0xe0] sm:$0xff]   ;;  %v727_v51 = vld [vmem:[#allocation5 + $0xd8] sm:$0xff]   ;;  %v728_v62 = vld [vmem:[#allocation5 + $0xd0] sm:$0xff]  }
  0x30   :  { %617 = vmatprep.subr.bf16.mxu0 %v826_v3  ;;  %v548_v52 = vld [vmem:[#allocation7 + $0x1] ss:$0 sm:$0xff]  ;;  %v729_v63 = vld [vmem:[#allocation5 + $0xc8] sm:$0xff]   ;;  %v557_v1 = vld [vmem:[#allocation7 + $0x2] ss:$0 sm:$0xff] }
  0x31   :  { %636 = vmatpush3.bf16.msra.mxu1 %v709_v13  ;;  %v566_v12 = vld [vmem:[#allocation7 + $0x3] ss:$0 sm:$0xff] }
  0x32   :  { %637 = vmatprep.subr.bf16.mxu1 %v826_v3 }
  0x33   :  { %618 = vmatpush3.bf16.msra.mxu0 %v702_v6 }
  0x34   :  { %619 = vmatprep.subr.bf16.mxu0 %v826_v3 }
  0x35   :  { %638 = vmatpush3.bf16.msra.mxu1 %v710_v14 }
  0x36   :  { %639 = vmatprep.subr.bf16.mxu1 %v826_v3 }
  0x37   :  { %620 = vmatpush3.bf16.msra.mxu0 %v703_v7 }
  0x38   :  { %621 = vmatprep.subr.bf16.mxu0 %v826_v3 }
  0x39   :  { %640 = vmatpush3.bf16.msra.mxu1 %v711_v15 }
  0x3a   :  { %641 = vmatprep.subr.bf16.mxu1 %v826_v3 }
  0x3b   :  { %622 = vmatpush3.bf16.msra.mxu0 %v704_v8 }
  0x3c   :  { %623 = vmatprep.subr.bf16.mxu0 %v826_v3 }
  0x3d   :  { %642 = vmatpush3.bf16.msra.mxu1 %v712_v26 }
  0x3e   :  { %643 = vmatprep.subr.bf16.mxu1 %v826_v3 }
  0x3f   :  { %624 = vmatpush3.bf16.msra.mxu0 %v705_v9 }
  0x40   :  { %625 = vmatprep.subr.bf16.mxu0 %v826_v3 }
  0x41   :  { %644 = vmatpush3.bf16.msra.mxu1 %v713_v27 }
  0x42   :  { %645 = vmatprep.subr.bf16.mxu1 %v826_v3 }
  0x43   :  { %626 = vmatpush3.bf16.msra.mxu0 %v706_v10 }
  0x44   :  { %651 = vmatprep.subr.bf16.mxu0 %v826_v3 }
  0x45   :  { %646 = vmatpush3.bf16.msra.mxu1 %v714_v28 }
  0x46   :  { %671 = vmatprep.subr.bf16.mxu1 %v826_v3 }
  0xb1   :  { %v56_v16 = vpop.xlane.xlu0 %55 }
  0xb2   :  { %731 = vrsqrt.f32 %v56_v16  ;;  %vm59_vm1 = vcmp.eq.f32.partialorder %v56_v16, inf  ;;  %v62_v19 = vand.u32 2147483648, %v56_v16  ;;  %vm61_vm2 = vcmp.eq.f32.partialorder %v56_v16, 0.0 }
  0xbf   :  { %v732_v17 = vpop.eup %731 }
  0xc0   :  { %v58_v18 = vmul.f32 %v732_v17, %v56_v16 }
  0xc2   :  { %v60_v20 = vsel %vm59_vm1, %v56_v16, %v58_v18 }
  0xc3   :  { %v63_v21 = vsel %vm61_vm2, %v62_v19, %v60_v20 }
  0xc4   :  { %v64_v22 = vmax.f32 %v63_v21, 1e-12 }
  0xc6   :  { %733 = vrcp.f32 %v64_v22 }
  0xd3   :  { %v734_v23 = vpop.eup %733 }
  0xd4   :  { %v66_v24 = vmul.f32 %v734_v23, %v53_v0  ;;  %v730_v0 = vld [vmem:[#allocation5 + $0xc0] sm:$0xff]  }
  0xd6   :  { %v67_v25 = vpack.c.bf16 %v66_v24, %v66_v24 }
  0xd8   :  { %628 = vmatmul.mubr.bf16.vlgmr.msra.gmra.mxu0 %v67_v25 }
  0xd9   :  { %667 = vmatprep.mubr.msk.bf16.mxu0 %vm827_vm0, %v826_v3  ;;  %652 = vmatpush3.bf16.msra.mxu0 %v715_v29 }
  0xda   :  { %653 = vmatprep.subr.bf16.mxu0 %v826_v3 }
  0xdd   :  { %654 = vmatpush3.bf16.msra.mxu0 %v716_v30 }
  0xde   :  { %655 = vmatprep.subr.bf16.mxu0 %v826_v3 }
  0xe1   :  { %656 = vmatpush3.bf16.msra.mxu0 %v717_v31 }
  0xe2   :  { %657 = vmatprep.subr.bf16.mxu0 %v826_v3 }
  0xe5   :  { %658 = vmatpush3.bf16.msra.mxu0 %v718_v32 }
  0xe6   :  { %659 = vmatprep.subr.bf16.mxu0 %v826_v3 }
  0xe9   :  { %660 = vmatpush3.bf16.msra.mxu0 %v719_v33 }
  0xea   :  { %661 = vmatprep.subr.bf16.mxu0 %v826_v3 }
  0xed   :  { %662 = vmatpush3.bf16.msra.mxu0 %v720_v44 }
  0xee   :  { %663 = vmatprep.subr.bf16.mxu0 %v826_v3 }
  0xf1   :  { %664 = vmatpush3.bf16.msra.mxu0 %v721_v45 }
  0xf2   :  { %665 = vmatprep.subr.bf16.mxu0 %v826_v3 }
  0xf5   :  { %666 = vmatpush3.bf16.msra.mxu0 %v722_v46 }
 0x198   :  { %v171_v35 = vpop.f32.mrf.mxu0 }
 0x199   :  { %v172_v36 = vadd.f32 %v539_v34, %v171_v35 }
 0x19a   :  { %v629_v37 = vpop.f32.mrf.mxu0 }
 0x19b   :  { %v177_v38 = vmul.f32 0.1, %v172_v36 }
 0x19c   :  { %v174_v39 = vpop.f32.mrf.mxu0 }
 0x19d   :  { %v178_v40 = vmul.f32 0.2, %v177_v38 }
 0x19e   :  { %v630_v41 = vpop.f32.mrf.mxu0 }
 0x19f   :  { %v179_v42 = vmax.f32 %v177_v38, %v178_v40 }
 0x1a1   :  { %v180_v43 = vpack.c.bf16 %v179_v42, %v179_v42 }
 0x1a3   :  { %648 = vmatmul.mubr.bf16.vlgmr.msra.gmra.mxu1 %v180_v43 }
 0x1a4   :  { %687 = vmatprep.mubr.msk.bf16.mxu1 %vm827_vm0, %v826_v3  ;;  %672 = vmatpush3.bf16.msra.mxu1 %v723_v47 }
 0x1a5   :  { %673 = vmatprep.subr.bf16.mxu1 %v826_v3 }
 0x1a8   :  { %674 = vmatpush3.bf16.msra.mxu1 %v724_v48 }
 0x1a9   :  { %675 = vmatprep.subr.bf16.mxu1 %v826_v3 }
 0x1ac   :  { %676 = vmatpush3.bf16.msra.mxu1 %v725_v49 }
 0x1ad   :  { %677 = vmatprep.subr.bf16.mxu1 %v826_v3 }
 0x1b0   :  { %678 = vmatpush3.bf16.msra.mxu1 %v726_v50 }
 0x1b1   :  { %679 = vmatprep.subr.bf16.mxu1 %v826_v3 }
 0x1b4   :  { %680 = vmatpush3.bf16.msra.mxu1 %v727_v51 }
 0x1b5   :  { %681 = vmatprep.subr.bf16.mxu1 %v826_v3 }
 0x1b8   :  { %682 = vmatpush3.bf16.msra.mxu1 %v728_v62 }
 0x1b9   :  { %683 = vmatprep.subr.bf16.mxu1 %v826_v3 }
 0x1bc   :  { %684 = vmatpush3.bf16.msra.mxu1 %v729_v63 }
 0x1bd   :  { %685 = vmatprep.subr.bf16.mxu1 %v826_v3 }
 0x1c0   :  { %686 = vmatpush3.bf16.msra.mxu1 %v730_v0 }
 0x263   :  { %v285_v53 = vpop.f32.mrf.mxu1 }
 0x264   :  { %v286_v54 = vadd.f32 %v548_v52, %v285_v53 }
 0x265   :  { %v649_v55 = vpop.f32.mrf.mxu1 }
 0x266   :  { %v291_v56 = vmul.f32 0.1, %v286_v54 }
 0x267   :  { %v288_v57 = vpop.f32.mrf.mxu1 }
 0x268   :  { %v292_v58 = vmul.f32 0.2, %v291_v56 }
 0x269   :  { %v650_v59 = vpop.f32.mrf.mxu1 }
 0x26a   :  { %v293_v60 = vmax.f32 %v291_v56, %v292_v58 }
 0x26c   :  { %v294_v61 = vpack.c.bf16 %v293_v60, %v293_v60 }
 0x26e   :  { %668 = vmatmul.mubr.bf16.vlgmr.msra.gmra.mxu0 %v294_v61 }
 0x32e   :  { %v399_v2 = vpop.f32.mrf.mxu0 }
 0x32f   :  { %v400_v4 = vadd.f32 %v557_v1, %v399_v2 }
 0x330   :  { %v669_v5 = vpop.f32.mrf.mxu0 }
 0x331   :  { %v405_v6 = vmul.f32 0.1, %v400_v4 }
 0x332   :  { %v402_v7 = vpop.f32.mrf.mxu0 }
 0x333   :  { %v406_v8 = vmul.f32 0.2, %v405_v6 }
 0x334   :  { %v670_v9 = vpop.f32.mrf.mxu0 }
 0x335   :  { %v407_v10 = vmax.f32 %v405_v6, %v406_v8 }
 0x337   :  { %v408_v11 = vpack.c.bf16 %v407_v10, %v407_v10 }
 0x339   :  { %688 = vmatmul.mubr.bf16.vlgmr.msra.gmra.mxu1 %v408_v11 }
 0x3f9   :  { %v513_v13 = vpop.f32.mrf.mxu1 }
 0x3fa   :  { %v514_v14 = vadd.f32 %v566_v12, %v513_v13 }
 0x3fb   :  { %v689_v15 = vpop.f32.mrf.mxu1 }
 0x3fc   :  { %v519_v16 = vmul.f32 0.1, %v514_v14 }
 0x3fd   :  { %v516_v17 = vpop.f32.mrf.mxu1 }
 0x3fe   :  { %v520_v3 = vmul.f32 0.2, %v519_v16 }
 0x3ff   :  { %v690_v18 = vpop.f32.mrf.mxu1 }
 0x400   :  { %v521_v19 = vmax.f32 %v519_v16, %v520_v3 }
 0x402   :  { %522 = vst [vmem:[#allocation8] sm:$0xff] %v521_v19 }
 0x403   :  { %806 = shalt.err (!%p803_p5)
}
 0x404   :  { %532 = dma.vmem_to_hbm [thread:$0]  %s530_s2, 128, %s904_s3, [#allocation4]  }
 0x405   :  { %819 = dma.done.wait [#allocation4], 128  }
 0x406   :  { %820 = vsyncadd [#allocation4], 4294967168 }
 0x407   :  { %536 = vsyncpa [#allocation3], 1 }
 0x408   :  { %537 = vsyncpa [#allocation6], 1 }
 0x409   :  { %538 = vsyncpa [#allocation4], 1 }

</bundles_post_ra>
